<compile_context>
chip_gen: v6e
topology: v6e:2x2x1
jax: 0.10.0
libtpu: 0.0.40
codegen_flags: <defaults>
</compile_context>

<pallas_src>
import functools

import jax
import jax.numpy as jnp
from jax.experimental import pallas as pl
from jax.experimental.pallas import tpu as pltpu


# ----------------------------------------------------------------------------
# Shared conv body (im2col-free, banded weights, bf16 MXU, f32 accumulate)
# ----------------------------------------------------------------------------
def _conv_acc(x_ref, w_ref, *, kh, dh, ho):
    """Return the f32 (B*Ho, Wo*Cout) conv accumulator for this grid step.

    x_ref : (B, Hp_pad, K_pad)      f32  padded input row-slabs for B images
    w_ref : (kh, K_pad, Wo*Cout)    bf16 banded weights (kw taps + Cin folded in)
    """
    b, hp_pad, k_pad = x_ref.shape
    wocout = w_ref.shape[2]
    acc = jnp.zeros((b * ho, wocout), jnp.float32)

    # Load each image slab once from VMEM; height taps are generated with sublane
    # rolls (XLU slot, essentially free) + offset-0 slices, so there are no
    # sublane-misaligned slices and the input is read from HBM exactly once.
    slabs = [x_ref[bi] for bi in range(b)]                 # each (Hp_pad, K_pad) f32
    for i in range(kh):                                    # kh static -> unrolled
        sh = i * dh
        taps = [s if sh == 0 else pltpu.roll(s, shift=hp_pad - sh, axis=0)
                for s in slabs]
        lhs = jnp.concatenate([t[:ho, :] for t in taps], axis=0)   # (B*Ho, K_pad)
        acc = acc + jnp.dot(lhs.astype(jnp.bfloat16), w_ref[i],
                            preferred_element_type=jnp.float32)
    return acc


# ----------------------------------------------------------------------------
# Pass 1: stats only — per-step BatchNorm partials, no activation written
# ----------------------------------------------------------------------------
def _conv_stats_kernel(x_ref, w_ref, s_ref, ss_ref, *, kh, dh, ho):
    acc = _conv_acc(x_ref, w_ref, kh=kh, dh=dh, ho=ho)
    s_ref[0] = jnp.sum(acc, axis=0, keepdims=True)         # (1, Wo*Cout)
    ss_ref[0] = jnp.sum(acc * acc, axis=0, keepdims=True)   # (1, Wo*Cout)


# ----------------------------------------------------------------------------
# Pass 2: recompute conv, fuse BatchNorm apply + ReLU, lane-dense store
# ----------------------------------------------------------------------------
def _conv_bn_relu_kernel(x_ref, w_ref, scale_ref, shift_ref, o_ref, *, kh, dh, ho):
    acc = _conv_acc(x_ref, w_ref, kh=kh, dh=dh, ho=ho)
    # BN + ReLU in f32 vregs (v5e-friendly); scale/shift broadcast over rows.
    y = jnp.maximum(acc * scale_ref[...] + shift_ref[...], 0.0)
    b = o_ref.shape[0]
    o_ref[...] = y.reshape(b, ho, y.shape[1]).astype(o_ref.dtype)


# ----------------------------------------------------------------------------
# Wrapper
# ----------------------------------------------------------------------------
def conv2d_layer_forward(x, weight, bias, gamma, beta, *,
                         kernel_size=(3, 3), dilation=(1, 1), eps=1e-5):
    """Forward of Conv2d_layer(mode='conv', padding='SAME', stride=1,
    norm='batch' (training batch stats), activation='relu') for NCHW input."""
    n, cin, h, w = x.shape
    kh, kw = kernel_size
    dh, dw = dilation
    cout = weight.shape[0]

    # --- reflection 'SAME' padding (matches nn.ReflectionPad2d convention) ---
    f_pad = (kh - 1) * dh
    t_pad = (kw - 1) * dw
    t_l, t_r = t_pad // 2, t_pad - t_pad // 2            # width  (left, right)
    f_l, f_r = f_pad // 2, f_pad - f_pad // 2            # height (top, bottom)
    xp = jnp.pad(x, ((0, 0), (0, 0), (f_l, f_r), (t_l, t_r)), mode="reflect")
    hp, wp = h + f_pad, w + t_pad
    ho, wo = h, w                                        # stride=1, SAME
    wocout = wo * cout

    # --- NCHW -> row slabs (N, Hp, Wp*Cin), padded to clean (8,128) tiles ----
    k_raw = wp * cin
    k_pad = ((k_raw + 127) // 128) * 128                 # lane-aligned contraction
    hp_pad = ((hp + 7) // 8) * 8                         # sublane-aligned rows
    x_rows = jnp.transpose(xp, (0, 2, 3, 1)).reshape(n, hp, k_raw)
    x_rows = jnp.pad(x_rows, ((0, 0), (0, hp_pad - hp), (0, k_pad - k_raw)))
    x_rows = x_rows.astype(jnp.float32)

    # --- fold width taps + Cin contraction into a banded weight --------------
    # bweight[i, p*Cin+c, w*Cout+o] = weight[o, c, i, j]  iff  p == w + j*dw
    w_taps = jnp.transpose(weight, (2, 3, 1, 0)).astype(jnp.float32)  # (kh,kw,Cin,Cout)
    p_idx = jnp.arange(wp)[None, :, None]
    tgt = jnp.arange(wo)[None, None, :] + jnp.arange(kw)[:, None, None] * dw
    place = (p_idx == tgt).astype(jnp.float32)           # (kw, Wp, Wo)
    bweight = jnp.einsum("jpw,ijco->ipcwo", place, w_taps)
    bweight = bweight.reshape(kh, k_raw, wocout)
    bweight = jnp.pad(bweight, ((0, 0), (0, k_pad - k_raw), (0, 0)))
    bweight = bweight.astype(jnp.bfloat16)

    # Per-channel conv bias is exactly cancelled by train-mode BatchNorm's batch-mean
    # subtraction; argument kept for API parity.
    del bias

    # --- images per grid step: fill the MXU M dim (target ~256 rows) ---------
    cap = max(1, 256 // ho)
    img_blk = 1
    for d in range(1, n + 1):
        if n % d == 0 and d <= cap:
            img_blk = d
    steps = n // img_blk

    cparams = pltpu.CompilerParams(
        dimension_semantics=("parallel",),               # shard image blocks across TCs
        vmem_limit_bytes=48 * 1024 * 1024,               # fits v7x's 64 MiB VMEM
    )
    kern = dict(kh=kh, dh=dh, ho=ho)

    # --- pass 1: stats only (no conv activation written to HBM) --------------
    psum, psumsq = pl.pallas_call(
        functools.partial(_conv_stats_kernel, **kern),
        out_shape=(jax.ShapeDtypeStruct((steps, 1, wocout), jnp.float32),
                   jax.ShapeDtypeStruct((steps, 1, wocout), jnp.float32)),
        grid=(steps,),
        in_specs=[
            pl.BlockSpec((img_blk, hp_pad, k_pad), lambda i: (i, 0, 0)),
            pl.BlockSpec((kh, k_pad, wocout), lambda i: (0, 0, 0)),
        ],
        out_specs=(pl.BlockSpec((1, 1, wocout), lambda i: (i, 0, 0)),
                   pl.BlockSpec((1, 1, wocout), lambda i: (i, 0, 0))),
        compiler_params=cparams,
    )(x_rows, bweight)

    # --- finalize batch statistics (tiny per-channel XLA glue) ---------------
    # NOTE: E[x^2]-E[x]^2 in f32 is cancellation-prone for |mean| >> std; acceptable here.
    cnt = n * ho * wo
    ch_sum = psum.sum(axis=(0, 1)).reshape(wo, cout).sum(axis=0)      # (Cout,)
    ch_sq = psumsq.sum(axis=(0, 1)).reshape(wo, cout).sum(axis=0)     # (Cout,)
    mean = ch_sum / cnt
    var = ch_sq / cnt - mean * mean                      # biased batch variance (BN train)
    scale_c = gamma.astype(jnp.float32) * jax.lax.rsqrt(var + eps)
    shift_c = beta.astype(jnp.float32) - mean * scale_c
    scale_row = jnp.tile(scale_c, wo).reshape(1, wocout)   # interleaved w*Cout+co
    shift_row = jnp.tile(shift_c, wo).reshape(1, wocout)

    # --- pass 2: recompute conv + fused BN + ReLU, write activation once -----
    bn_out = pl.pallas_call(
        functools.partial(_conv_bn_relu_kernel, **kern),
        out_shape=jax.ShapeDtypeStruct((n, ho, wocout), jnp.float32),
        grid=(steps,),
        in_specs=[
            pl.BlockSpec((img_blk, hp_pad, k_pad), lambda i: (i, 0, 0)),
            pl.BlockSpec((kh, k_pad, wocout), lambda i: (0, 0, 0)),
            pl.BlockSpec((1, wocout), lambda i: (0, 0)),
            pl.BlockSpec((1, wocout), lambda i: (0, 0)),
        ],
        out_specs=pl.BlockSpec((img_blk, ho, wocout), lambda i: (i, 0, 0)),
        compiler_params=cparams,
    )(x_rows, bweight, scale_row, shift_row)

    # --- model boundary: back to NCHW (tiny transpose at toy sizes) ----------
    out = jnp.transpose(bn_out.reshape(n, ho, wo, cout), (0, 3, 1, 2))
    return out.astype(x.dtype)


# ----------------------------------------------------------------------------
# Main
# ----------------------------------------------------------------------------
if __name__ == "__main__":
    key = jax.random.PRNGKey(0)
    k_x, k_w, k_b = jax.random.split(key, 3)

    N, C_IN, H, W = 2, 4, 16, 16
    C_OUT, KH, KW = 8, 3, 3

    x = jax.random.normal(k_x, (N, C_IN, H, W), dtype=jnp.float32)

    # deterministic parameter init (kaiming-uniform-like scale, synthetic)
    fan_in = C_IN * KH * KW
    bound = 1.0 / (fan_in ** 0.5)
    weight = jax.random.uniform(k_w, (C_OUT, C_IN, KH, KW),
                                minval=-bound, maxval=bound, dtype=jnp.float32)
    bias = jax.random.uniform(k_b, (C_OUT,), minval=-bound, maxval=bound,
                              dtype=jnp.float32)
    gamma = jnp.ones((C_OUT,), jnp.float32)   # BatchNorm2d default affine init
    beta = jnp.zeros((C_OUT,), jnp.float32)

    fwd = jax.jit(functools.partial(conv2d_layer_forward,
                                    kernel_size=(KH, KW), dilation=(1, 1)))
    out = fwd(x, weight, bias, gamma, beta)
    jax.block_until_ready(out)

    assert out.shape == (N, C_OUT, H, W), out.shape
    print("KERNEL_OK")
</pallas_src>

<mosaic_0001>
module attributes {stable_mosaic.version = 11 : i64} {
  func.func @_conv_stats_kernel(%arg0: i32, %arg1: memref<2x24x128xf32, #tpu.memory_space<vmem>>, %arg2: memref<3x128x128xbf16, #tpu.memory_space<vmem>>, %arg3: memref<1x1x128xf32, #tpu.memory_space<vmem>>, %arg4: memref<1x1x128xf32, #tpu.memory_space<vmem>>) attributes {dimension_semantics = [#tpu.dimension_semantics<parallel>], iteration_bounds = array<i64: 1>, scalar_prefetch = 0 : i64, scratch_operands = 0 : i64, tpu.core_type = #tpu.core_type<tc>, window_params = [{transform_indices = @transform_0, window_bounds = array<i64: 2, 24, 128>}, {pipeline_mode = #tpu.pipeline_mode<synchronous>, transform_indices = @transform_1, window_bounds = array<i64: 3, 128, 128>}, {transform_indices = @transform_2, window_bounds = array<i64: 1, 1, 128>}, {transform_indices = @transform_3, window_bounds = array<i64: 1, 1, 128>}]} {
    %cst = arith.constant 0.000000e+00 : f32
    %0 = vector.broadcast %cst : f32 to vector<32x128xf32>
    %c0 = arith.constant 0 : index
    %c0_0 = arith.constant 0 : index
    %c0_1 = arith.constant 0 : index
    %1 = vector.load %arg1[%c0, %c0_0, %c0_1] : memref<2x24x128xf32, #tpu.memory_space<vmem>>, vector<1x24x128xf32>
    %2 = vector.shape_cast %1 : vector<1x24x128xf32> to vector<24x128xf32>
    %c1 = arith.constant 1 : index
    %c0_2 = arith.constant 0 : index
    %c0_3 = arith.constant 0 : index
    %3 = vector.load %arg1[%c1, %c0_2, %c0_3] : memref<2x24x128xf32, #tpu.memory_space<vmem>>, vector<1x24x128xf32>
    %4 = vector.shape_cast %3 : vector<1x24x128xf32> to vector<24x128xf32>
    %5 = vector.extract_strided_slice %2 {offsets = [0, 0], sizes = [16, 128], strides = [1, 1]} : vector<24x128xf32> to vector<16x128xf32>
    %6 = vector.extract_strided_slice %4 {offsets = [0, 0], sizes = [16, 128], strides = [1, 1]} : vector<24x128xf32> to vector<16x128xf32>
    %7 = tpu.concatenate %5, %6 in 0 : vector<16x128xf32>, vector<16x128xf32> -> vector<32x128xf32>
    %8 = arith.truncf %7 : vector<32x128xf32> to vector<32x128xbf16>
    %c0_4 = arith.constant 0 : index
    %c0_5 = arith.constant 0 : index
    %c0_6 = arith.constant 0 : index
    %9 = vector.load %arg2[%c0_4, %c0_5, %c0_6] : memref<3x128x128xbf16, #tpu.memory_space<vmem>>, vector<1x128x128xbf16>
    %10 = vector.shape_cast %9 : vector<1x128x128xbf16> to vector<128x128xbf16>
    %cst_7 = arith.constant dense<0.000000e+00> : vector<32x128xf32>
    %11 = tpu.matmul %8, %10, %cst_7 {dimension_numbers = #tpu.dot_dimension_numbers<[1], [0], [0], [1], [0, 0, 1, 1], [], []>} : vector<32x128xbf16>, vector<128x128xbf16>, vector<32x128xf32> -> vector<32x128xf32>
    %12 = arith.addf %0, %11 : vector<32x128xf32>
    %c23_i32 = arith.constant 23 : i32
    %13 = tpu.dynamic_rotate %2 by %c23_i32 dim 0 : vector<24x128xf32>, i32 -> vector<24x128xf32>
    %c23_i32_8 = arith.constant 23 : i32
    %14 = tpu.dynamic_rotate %4 by %c23_i32_8 dim 0 : vector<24x128xf32>, i32 -> vector<24x128xf32>
    %15 = vector.extract_strided_slice %13 {offsets = [0, 0], sizes = [16, 128], strides = [1, 1]} : vector<24x128xf32> to vector<16x128xf32>
    %16 = vector.extract_strided_slice %14 {offsets = [0, 0], sizes = [16, 128], strides = [1, 1]} : vector<24x128xf32> to vector<16x128xf32>
    %17 = tpu.concatenate %15, %16 in 0 : vector<16x128xf32>, vector<16x128xf32> -> vector<32x128xf32>
    %18 = arith.truncf %17 : vector<32x128xf32> to vector<32x128xbf16>
    %c1_9 = arith.constant 1 : index
    %c0_10 = arith.constant 0 : index
    %c0_11 = arith.constant 0 : index
    %19 = vector.load %arg2[%c1_9, %c0_10, %c0_11] : memref<3x128x128xbf16, #tpu.memory_space<vmem>>, vector<1x128x128xbf16>
    %20 = vector.shape_cast %19 : vector<1x128x128xbf16> to vector<128x128xbf16>
    %cst_12 = arith.constant dense<0.000000e+00> : vector<32x128xf32>
    %21 = tpu.matmul %18, %20, %cst_12 {dimension_numbers = #tpu.dot_dimension_numbers<[1], [0], [0], [1], [0, 0, 1, 1], [], []>} : vector<32x128xbf16>, vector<128x128xbf16>, vector<32x128xf32> -> vector<32x128xf32>
    %22 = arith.addf %12, %21 : vector<32x128xf32>
    %c22_i32 = arith.constant 22 : i32
    %23 = tpu.dynamic_rotate %2 by %c22_i32 dim 0 : vector<24x128xf32>, i32 -> vector<24x128xf32>
    %c22_i32_13 = arith.constant 22 : i32
    %24 = tpu.dynamic_rotate %4 by %c22_i32_13 dim 0 : vector<24x128xf32>, i32 -> vector<24x128xf32>
    %25 = vector.extract_strided_slice %23 {offsets = [0, 0], sizes = [16, 128], strides = [1, 1]} : vector<24x128xf32> to vector<16x128xf32>
    %26 = vector.extract_strided_slice %24 {offsets = [0, 0], sizes = [16, 128], strides = [1, 1]} : vector<24x128xf32> to vector<16x128xf32>
    %27 = tpu.concatenate %25, %26 in 0 : vector<16x128xf32>, vector<16x128xf32> -> vector<32x128xf32>
    %28 = arith.truncf %27 : vector<32x128xf32> to vector<32x128xbf16>
    %c2 = arith.constant 2 : index
    %c0_14 = arith.constant 0 : index
    %c0_15 = arith.constant 0 : index
    %29 = vector.load %arg2[%c2, %c0_14, %c0_15] : memref<3x128x128xbf16, #tpu.memory_space<vmem>>, vector<1x128x128xbf16>
    %30 = vector.shape_cast %29 : vector<1x128x128xbf16> to vector<128x128xbf16>
    %cst_16 = arith.constant dense<0.000000e+00> : vector<32x128xf32>
    %31 = tpu.matmul %28, %30, %cst_16 {dimension_numbers = #tpu.dot_dimension_numbers<[1], [0], [0], [1], [0, 0, 1, 1], [], []>} : vector<32x128xbf16>, vector<128x128xbf16>, vector<32x128xf32> -> vector<32x128xf32>
    %32 = arith.addf %22, %31 : vector<32x128xf32>
    %cst_17 = arith.constant dense<0.000000e+00> : vector<128xf32>
    %33 = vector.multi_reduction <add>, %32, %cst_17 [0] : vector<32x128xf32> to vector<128xf32>
    %34 = vector.shape_cast %33 : vector<128xf32> to vector<1x128xf32>
    %c0_18 = arith.constant 0 : index
    %c0_19 = arith.constant 0 : index
    %c0_20 = arith.constant 0 : index
    %35 = vector.load %arg3[%c0_18, %c0_19, %c0_20] : memref<1x1x128xf32, #tpu.memory_space<vmem>>, vector<1x1x128xf32>
    %36 = vector.shape_cast %35 : vector<1x1x128xf32> to vector<1x128xf32>
    %37 = vector.shape_cast %34 : vector<1x128xf32> to vector<1x1x128xf32>
    tpu.vector_store %arg3[%c0_18, %c0_19, %c0_20], %37 {strides = array<i32>} : memref<1x1x128xf32, #tpu.memory_space<vmem>>, vector<1x1x128xf32>,
    %38 = arith.mulf %32, %32 : vector<32x128xf32>
    %cst_21 = arith.constant dense<0.000000e+00> : vector<128xf32>
    %39 = vector.multi_reduction <add>, %38, %cst_21 [0] : vector<32x128xf32> to vector<128xf32>
    %40 = vector.shape_cast %39 : vector<128xf32> to vector<1x128xf32>
    %c0_22 = arith.constant 0 : index
    %c0_23 = arith.constant 0 : index
    %c0_24 = arith.constant 0 : index
    %41 = vector.load %arg4[%c0_22, %c0_23, %c0_24] : memref<1x1x128xf32, #tpu.memory_space<vmem>>, vector<1x1x128xf32>
    %42 = vector.shape_cast %41 : vector<1x1x128xf32> to vector<1x128xf32>
    %43 = vector.shape_cast %40 : vector<1x128xf32> to vector<1x1x128xf32>
    tpu.vector_store %arg4[%c0_22, %c0_23, %c0_24], %43 {strides = array<i32>} : memref<1x1x128xf32, #tpu.memory_space<vmem>>, vector<1x1x128xf32>,
    return
  }
  func.func @transform_0(%arg0: i32) -> (i32, i32, i32) {
    %c0_i32 = arith.constant 0 : i32
    %c0_i32_0 = arith.constant 0 : i32
    %c0_i32_1 = arith.constant 0 : i32
    return %arg0, %c0_i32, %c0_i32_0 : i32, i32, i32
  }
  func.func @transform_1(%arg0: i32) -> (i32, i32, i32) {
    %c0_i32 = arith.constant 0 : i32
    %c0_i32_0 = arith.constant 0 : i32
    %c0_i32_1 = arith.constant 0 : i32
    %c0_i32_2 = arith.constant 0 : i32
    return %c0_i32, %c0_i32_0, %c0_i32_1 : i32, i32, i32
  }
  func.func @transform_2(%arg0: i32) -> (i32, i32, i32) {
    %c0_i32 = arith.constant 0 : i32
    %c0_i32_0 = arith.constant 0 : i32
    %c0_i32_1 = arith.constant 0 : i32
    return %arg0, %c0_i32, %c0_i32_0 : i32, i32, i32
  }
  func.func @transform_3(%arg0: i32) -> (i32, i32, i32) {
    %c0_i32 = arith.constant 0 : i32
    %c0_i32_0 = arith.constant 0 : i32
    %c0_i32_1 = arith.constant 0 : i32
    return %arg0, %c0_i32, %c0_i32_0 : i32, i32, i32
  }
}

module attributes {stable_mosaic.version = 11 : i64} {
  func.func @_conv_bn_relu_kernel(%arg0: i32, %arg1: memref<2x24x128xf32, #tpu.memory_space<vmem>>, %arg2: memref<3x128x128xbf16, #tpu.memory_space<vmem>>, %arg3: memref<1x128xf32, #tpu.memory_space<vmem>>, %arg4: memref<1x128xf32, #tpu.memory_space<vmem>>, %arg5: memref<2x16x128xf32, #tpu.memory_space<vmem>>) attributes {dimension_semantics = [#tpu.dimension_semantics<parallel>], iteration_bounds = array<i64: 1>, scalar_prefetch = 0 : i64, scratch_operands = 0 : i64, tpu.core_type = #tpu.core_type<tc>, window_params = [{transform_indices = @transform_0, window_bounds = array<i64: 2, 24, 128>}, {pipeline_mode = #tpu.pipeline_mode<synchronous>, transform_indices = @transform_1, window_bounds = array<i64: 3, 128, 128>}, {pipeline_mode = #tpu.pipeline_mode<synchronous>, transform_indices = @transform_2, window_bounds = array<i64: 1, 128>}, {pipeline_mode = #tpu.pipeline_mode<synchronous>, transform_indices = @transform_3, window_bounds = array<i64: 1, 128>}, {transform_indices = @transform_4, window_bounds = array<i64: 2, 16, 128>}]} {
    %cst = arith.constant 0.000000e+00 : f32
    %0 = vector.broadcast %cst : f32 to vector<32x128xf32>
    %c0 = arith.constant 0 : index
    %c0_0 = arith.constant 0 : index
    %c0_1 = arith.constant 0 : index
    %1 = vector.load %arg1[%c0, %c0_0, %c0_1] : memref<2x24x128xf32, #tpu.memory_space<vmem>>, vector<1x24x128xf32>
    %2 = vector.shape_cast %1 : vector<1x24x128xf32> to vector<24x128xf32>
    %c1 = arith.constant 1 : index
    %c0_2 = arith.constant 0 : index
    %c0_3 = arith.constant 0 : index
    %3 = vector.load %arg1[%c1, %c0_2, %c0_3] : memref<2x24x128xf32, #tpu.memory_space<vmem>>, vector<1x24x128xf32>
    %4 = vector.shape_cast %3 : vector<1x24x128xf32> to vector<24x128xf32>
    %5 = vector.extract_strided_slice %2 {offsets = [0, 0], sizes = [16, 128], strides = [1, 1]} : vector<24x128xf32> to vector<16x128xf32>
    %6 = vector.extract_strided_slice %4 {offsets = [0, 0], sizes = [16, 128], strides = [1, 1]} : vector<24x128xf32> to vector<16x128xf32>
    %7 = tpu.concatenate %5, %6 in 0 : vector<16x128xf32>, vector<16x128xf32> -> vector<32x128xf32>
    %8 = arith.truncf %7 : vector<32x128xf32> to vector<32x128xbf16>
    %c0_4 = arith.constant 0 : index
    %c0_5 = arith.constant 0 : index
    %c0_6 = arith.constant 0 : index
    %9 = vector.load %arg2[%c0_4, %c0_5, %c0_6] : memref<3x128x128xbf16, #tpu.memory_space<vmem>>, vector<1x128x128xbf16>
    %10 = vector.shape_cast %9 : vector<1x128x128xbf16> to vector<128x128xbf16>
    %cst_7 = arith.constant dense<0.000000e+00> : vector<32x128xf32>
    %11 = tpu.matmul %8, %10, %cst_7 {dimension_numbers = #tpu.dot_dimension_numbers<[1], [0], [0], [1], [0, 0, 1, 1], [], []>} : vector<32x128xbf16>, vector<128x128xbf16>, vector<32x128xf32> -> vector<32x128xf32>
    %12 = arith.addf %0, %11 : vector<32x128xf32>
    %c23_i32 = arith.constant 23 : i32
    %13 = tpu.dynamic_rotate %2 by %c23_i32 dim 0 : vector<24x128xf32>, i32 -> vector<24x128xf32>
    %c23_i32_8 = arith.constant 23 : i32
    %14 = tpu.dynamic_rotate %4 by %c23_i32_8 dim 0 : vector<24x128xf32>, i32 -> vector<24x128xf32>
    %15 = vector.extract_strided_slice %13 {offsets = [0, 0], sizes = [16, 128], strides = [1, 1]} : vector<24x128xf32> to vector<16x128xf32>
    %16 = vector.extract_strided_slice %14 {offsets = [0, 0], sizes = [16, 128], strides = [1, 1]} : vector<24x128xf32> to vector<16x128xf32>
    %17 = tpu.concatenate %15, %16 in 0 : vector<16x128xf32>, vector<16x128xf32> -> vector<32x128xf32>
    %18 = arith.truncf %17 : vector<32x128xf32> to vector<32x128xbf16>
    %c1_9 = arith.constant 1 : index
    %c0_10 = arith.constant 0 : index
    %c0_11 = arith.constant 0 : index
    %19 = vector.load %arg2[%c1_9, %c0_10, %c0_11] : memref<3x128x128xbf16, #tpu.memory_space<vmem>>, vector<1x128x128xbf16>
    %20 = vector.shape_cast %19 : vector<1x128x128xbf16> to vector<128x128xbf16>
    %cst_12 = arith.constant dense<0.000000e+00> : vector<32x128xf32>
    %21 = tpu.matmul %18, %20, %cst_12 {dimension_numbers = #tpu.dot_dimension_numbers<[1], [0], [0], [1], [0, 0, 1, 1], [], []>} : vector<32x128xbf16>, vector<128x128xbf16>, vector<32x128xf32> -> vector<32x128xf32>
    %22 = arith.addf %12, %21 : vector<32x128xf32>
    %c22_i32 = arith.constant 22 : i32
    %23 = tpu.dynamic_rotate %2 by %c22_i32 dim 0 : vector<24x128xf32>, i32 -> vector<24x128xf32>
    %c22_i32_13 = arith.constant 22 : i32
    %24 = tpu.dynamic_rotate %4 by %c22_i32_13 dim 0 : vector<24x128xf32>, i32 -> vector<24x128xf32>
    %25 = vector.extract_strided_slice %23 {offsets = [0, 0], sizes = [16, 128], strides = [1, 1]} : vector<24x128xf32> to vector<16x128xf32>
    %26 = vector.extract_strided_slice %24 {offsets = [0, 0], sizes = [16, 128], strides = [1, 1]} : vector<24x128xf32> to vector<16x128xf32>
    %27 = tpu.concatenate %25, %26 in 0 : vector<16x128xf32>, vector<16x128xf32> -> vector<32x128xf32>
    %28 = arith.truncf %27 : vector<32x128xf32> to vector<32x128xbf16>
    %c2 = arith.constant 2 : index
    %c0_14 = arith.constant 0 : index
    %c0_15 = arith.constant 0 : index
    %29 = vector.load %arg2[%c2, %c0_14, %c0_15] : memref<3x128x128xbf16, #tpu.memory_space<vmem>>, vector<1x128x128xbf16>
    %30 = vector.shape_cast %29 : vector<1x128x128xbf16> to vector<128x128xbf16>
    %cst_16 = arith.constant dense<0.000000e+00> : vector<32x128xf32>
    %31 = tpu.matmul %28, %30, %cst_16 {dimension_numbers = #tpu.dot_dimension_numbers<[1], [0], [0], [1], [0, 0, 1, 1], [], []>} : vector<32x128xbf16>, vector<128x128xbf16>, vector<32x128xf32> -> vector<32x128xf32>
    %32 = arith.addf %22, %31 : vector<32x128xf32>
    %c0_17 = arith.constant 0 : index
    %c0_18 = arith.constant 0 : index
    %33 = vector.load %arg3[%c0_17, %c0_18] : memref<1x128xf32, #tpu.memory_space<vmem>>, vector<1x128xf32>
    %34 = vector.broadcast %33 : vector<1x128xf32> to vector<32x128xf32>
    %35 = arith.mulf %32, %34 : vector<32x128xf32>
    %c0_19 = arith.constant 0 : index
    %c0_20 = arith.constant 0 : index
    %36 = vector.load %arg4[%c0_19, %c0_20] : memref<1x128xf32, #tpu.memory_space<vmem>>, vector<1x128xf32>
    %37 = vector.broadcast %36 : vector<1x128xf32> to vector<32x128xf32>
    %38 = arith.addf %35, %37 : vector<32x128xf32>
    %cst_21 = arith.constant 0.000000e+00 : f32
    %39 = vector.broadcast %cst_21 : f32 to vector<32x128xf32>
    %40 = arith.maximumf %38, %39 : vector<32x128xf32>
    %41 = vector.shape_cast %40 : vector<32x128xf32> to vector<2x16x128xf32>
    %c0_22 = arith.constant 0 : index
    %c0_23 = arith.constant 0 : index
    %c0_24 = arith.constant 0 : index
    %42 = vector.load %arg5[%c0_22, %c0_23, %c0_24] : memref<2x16x128xf32, #tpu.memory_space<vmem>>, vector<2x16x128xf32>
    tpu.vector_store %arg5[%c0_22, %c0_23, %c0_24], %41 {strides = array<i32>} : memref<2x16x128xf32, #tpu.memory_space<vmem>>, vector<2x16x128xf32>,
    return
  }
  func.func @transform_0(%arg0: i32) -> (i32, i32, i32) {
    %c0_i32 = arith.constant 0 : i32
    %c0_i32_0 = arith.constant 0 : i32
    %c0_i32_1 = arith.constant 0 : i32
    return %arg0, %c0_i32, %c0_i32_0 : i32, i32, i32
  }
  func.func @transform_1(%arg0: i32) -> (i32, i32, i32) {
    %c0_i32 = arith.constant 0 : i32
    %c0_i32_0 = arith.constant 0 : i32
    %c0_i32_1 = arith.constant 0 : i32
    %c0_i32_2 = arith.constant 0 : i32
    return %c0_i32, %c0_i32_0, %c0_i32_1 : i32, i32, i32
  }
  func.func @transform_2(%arg0: i32) -> (i32, i32) {
    %c0_i32 = arith.constant 0 : i32
    %c0_i32_0 = arith.constant 0 : i32
    %c0_i32_1 = arith.constant 0 : i32
    return %c0_i32, %c0_i32_0 : i32, i32
  }
  func.func @transform_3(%arg0: i32) -> (i32, i32) {
    %c0_i32 = arith.constant 0 : i32
    %c0_i32_0 = arith.constant 0 : i32
    %c0_i32_1 = arith.constant 0 : i32
    return %c0_i32, %c0_i32_0 : i32, i32
  }
  func.func @transform_4(%arg0: i32) -> (i32, i32, i32) {
    %c0_i32 = arith.constant 0 : i32
    %c0_i32_0 = arith.constant 0 : i32
    %c0_i32_1 = arith.constant 0 : i32
    return %arg0, %c0_i32, %c0_i32_0 : i32, i32, i32
  }
}

</mosaic_0001>

<bundles_post_ra>
// kernel: tile.13
= control target key start
LH: loop header
LB: loop body
LE: loop exit
PB: predicated region body
PF: predicated region fallthrough
CT: control target
= control target key end

     0   :  { %s28_s0 = inlined_call_operand.vmem [shape: f32[8], index: 0, kind: input, shape index: {}]   ;;  %s29_s1 = inlined_call_operand.vmem [shape: f32[16,8], index: 1, kind: output, shape index: {}]  }
   0x1   :  { %v4_v0 = vld [vmem:[%s28_s0] ss:$0 sm:$0xff] }
   0x2   :  { %5 = vst [vmem:[%s29_s1] sm:$0xff] %v4_v0  ;;  %8 = vst [vmem:[%s29_s1 + $0x8] sm:$0xff] %v4_v0 }

// kernel: tile.14
= control target key start
LH: loop header
LB: loop body
LE: loop exit
PB: predicated region body
PF: predicated region fallthrough
CT: control target
= control target key end

     0   :  { %s133_s10 = smov 120   ;;  %s134_s11 = smov 104   ;;  %vm3_vm0 = vcmask 64512   ;;  %vm9_vm1 = vcmask 1048512   ;;  %vm15_vm2 = vcmask 982912   ;;  %vm21_vm3 = vcmask 917312   ;;  %s209_s0 = inlined_call_operand.vmem [shape: f32[16,8], index: 0, kind: input, shape index: {}]   ;;  %s210_s1 = inlined_call_operand.vmem [shape: f32[1,128], index: 1, kind: output, shape index: {}]  }
   0x1   :  { %v103_v0 = vld [vmem:[%s209_s0 + $0xf] sm:$0x1]   ;;  %v105_v1 = vld [vmem:[%s209_s0 + $0xd] sm:$0x1]   ;;  %v104_v2 = vld [vmem:[%s209_s0 + $0xe] sm:$0x1]  }
   0x2   :  { %7 = vrot.lane.b32.xlu0 %v103_v0, %s133_s10  ;;  %19 = vrot.lane.b32.xlu1 %v105_v1, %s134_s11  ;;  %v106_v3 = vld [vmem:[%s209_s0 + $0xc] sm:$0x1]   ;;  %s135_s16 = smov 112   ;;  %s136_s17 = smov 96   ;;  %v107_v4 = vld [vmem:[%s209_s0 + $0xb] sm:$0x1]  }
   0x3   :  { %v108_v5 = vld [vmem:[%s209_s0 + $0xa] sm:$0x1]   ;;  %v2_v6 = vld [vmem:[%s209_s0] sm:$0x1]   ;;  %s137_s24 = smov 88   ;;  %s138_s25 = smov 80  }
   0x4   :  { %4 = vst.msk [vmem:[#allocation0] sm:$0x1] %vm3_vm0, %v2_v6   ;;  %v109_v7 = vld [vmem:[%s209_s0 + $0x9] sm:$0x1]   ;;  %v110_v8 = vld [vmem:[%s209_s0 + $0x8] sm:$0x1]  }
   0x5   :  { %s139_s30 = smov 72   ;;  %s140_s2 = smov 64   ;;  %v111_v9 = vld [vmem:[%s209_s0 + $0x7] sm:$0x1]   ;;  %v112_v10 = vld [vmem:[%s209_s0 + $0x6] sm:$0x1]  }
   0x6   :  { %13 = vrot.lane.b32.xlu0 %v104_v2, %s135_s16  ;;  %25 = vrot.lane.b32.xlu1 %v106_v3, %s136_s17  ;;  %s141_s7 = smov 56   ;;  %s142_s8 = smov 48   ;;  %v113_v11 = vld [vmem:[%s209_s0 + $0x5] sm:$0x1]   ;;  %v114_v12 = vld [vmem:[%s209_s0 + $0x4] sm:$0x1]  }
   0x7   :  { %s143_s13 = smov 40   ;;  %s144_s14 = smov 32   ;;  %v115_v13 = vld [vmem:[%s209_s0 + $0x3] sm:$0x1]   ;;  %v116_v14 = vld [vmem:[%s209_s0 + $0x2] sm:$0x1]  }
   0x8   :  { %s145_s19 = smov 24   ;;  %s146_s20 = smov 16   ;;  %v117_v15 = vld [vmem:[%s209_s0 + $0x1] sm:$0x1]   ;;  %vm27_vm4 = vcmask 851712   ;;  %vm33_vm5 = vcmask 786112  }
   0x9   :  { %s147_s0 = smov 8   ;;  %vm39_vm6 = vcmask 720512   ;;  %vm45_vm7 = vcmask 654912   ;;  %vm51_vm8 = vcmask 589312   ;;  %vm57_vm9 = vcmask 523712  }
   0xa   :  { %31 = vrot.lane.b32.xlu0 %v107_v4, %s137_s24  ;;  %37 = vrot.lane.b32.xlu1 %v108_v5, %s138_s25  ;;  %vm63_vm10 = vcmask 458112   ;;  %vm69_vm11 = vcmask 392512   ;;  %vm75_vm12 = vcmask 326912   ;;  %vm81_vm13 = vcmask 261312  }
   0xb   :  { %vm87_vm14 = vcmask 195712   ;;  %vm93_vm15 = vcmask 130112  }
   0xe   :  { %43 = vrot.lane.b32.xlu0 %v109_v7, %s139_s30  ;;  %49 = vrot.lane.b32.xlu1 %v110_v8, %s140_s2 }
  0x12   :  { %55 = vrot.lane.b32.xlu0 %v111_v9, %s141_s7  ;;  %61 = vrot.lane.b32.xlu1 %v112_v10, %s142_s8 }
  0x16   :  { %67 = vrot.lane.b32.xlu0 %v113_v11, %s143_s13  ;;  %73 = vrot.lane.b32.xlu1 %v114_v12, %s144_s14 }
  0x1a   :  { %79 = vrot.lane.b32.xlu0 %v115_v13, %s145_s19  ;;  %85 = vrot.lane.b32.xlu1 %v116_v14, %s146_s20 }
  0x1e   :  { %91 = vrot.lane.b32.xlu0 %v117_v15, %s147_s0 }
  0x74   :  { %v8_v16 = vpop.permute.xlu0 %7   ;;  %v20_v17 = vpop.permute.xlu1 %19  }
  0x75   :  { %10 = vst.msk [vmem:[#allocation0] sm:$0x1] %vm9_vm1, %v8_v16  }
  0x78   :  { %v14_v18 = vpop.permute.xlu0 %13   ;;  %v26_v19 = vpop.permute.xlu1 %25  }
  0x79   :  { %16 = vst.msk [vmem:[#allocation0] sm:$0x1] %vm15_vm2, %v14_v18  }
  0x7a   :  { %22 = vst.msk [vmem:[#allocation0] sm:$0x1] %vm21_vm3, %v20_v17  }
  0x7b   :  { %28 = vst.msk [vmem:[#allocation0] sm:$0x1] %vm27_vm4, %v26_v19  }
  0x7c   :  { %v32_v20 = vpop.permute.xlu0 %31   ;;  %v38_v21 = vpop.permute.xlu1 %37  }
  0x7d   :  { %34 = vst.msk [vmem:[#allocation0] sm:$0x1] %vm33_vm5, %v32_v20  }
  0x7e   :  { %40 = vst.msk [vmem:[#allocation0] sm:$0x1] %vm39_vm6, %v38_v21  }
  0x80   :  { %v44_v22 = vpop.permute.xlu0 %43   ;;  %v50_v23 = vpop.permute.xlu1 %49  }
  0x81   :  { %46 = vst.msk [vmem:[#allocation0] sm:$0x1] %vm45_vm7, %v44_v22  }
  0x82   :  { %52 = vst.msk [vmem:[#allocation0] sm:$0x1] %vm51_vm8, %v50_v23  }
  0x84   :  { %v56_v24 = vpop.permute.xlu0 %55   ;;  %v62_v25 = vpop.permute.xlu1 %61  }
  0x85   :  { %58 = vst.msk [vmem:[#allocation0] sm:$0x1] %vm57_vm9, %v56_v24  }
  0x86   :  { %64 = vst.msk [vmem:[#allocation0] sm:$0x1] %vm63_vm10, %v62_v25  }
  0x88   :  { %v68_v26 = vpop.permute.xlu0 %67   ;;  %v74_v27 = vpop.permute.xlu1 %73  }
  0x89   :  { %70 = vst.msk [vmem:[#allocation0] sm:$0x1] %vm69_vm11, %v68_v26  }
  0x8a   :  { %76 = vst.msk [vmem:[#allocation0] sm:$0x1] %vm75_vm12, %v74_v27  }
  0x8c   :  { %v80_v28 = vpop.permute.xlu0 %79   ;;  %v86_v29 = vpop.permute.xlu1 %85  }
  0x8d   :  { %82 = vst.msk [vmem:[#allocation0] sm:$0x1] %vm81_vm13, %v80_v28  }
  0x8e   :  { %88 = vst.msk [vmem:[#allocation0] sm:$0x1] %vm87_vm14, %v86_v29  }
  0x90   :  { %v92_v30 = vpop.permute.xlu0 %91  }
  0x91   :  { %94 = vst.msk [vmem:[#allocation0] sm:$0x1] %vm93_vm15, %v92_v30  }
  0x98   :  { %v99_v31 = vld [vmem:[#allocation0] sm:$0x1] }
  0x99   :  { %102 = vst [vmem:[%s210_s1] sm:$0x1] %v99_v31 }

// kernel: conv2d_layer_forward.2
= control target key start
LH: loop header
LB: loop body
LE: loop exit
PB: predicated region body
PF: predicated region fallthrough
CT: control target
= control target key end

     0   :  { %v42_v7 = vlaneseq  ;;  %s747_s1 = inlined_call_operand.vmem [shape: bf16[3,128,128], index: 1, kind: input, shape index: {}]   ;;  %s748_s0 = inlined_call_operand.vmem [shape: f32[2,24,128], index: 0, kind: input, shape index: {}]   ;;  %s749_s2 = inlined_call_operand.vmem [shape: f32[1,1,128], index: 2, kind: output, shape index: {0}]   ;;  %s750_s3 = inlined_call_operand.vmem [shape: f32[1,1,128], index: 3, kind: output, shape index: {1}]  }
   0x1   :  { %v577_v0 = vld [vmem:[%s747_s1 + $0x78] sm:$0xff]   ;;  %v579_v2 = vld [vmem:[%s747_s1 + $0x70] sm:$0xff]   ;;  %v581_v4 = vld [vmem:[%s747_s1 + $0x68] sm:$0xff]  }
   0x2   :  { %v578_v1 = vld [vmem:[%s747_s1 + $0x38] sm:$0xff]   ;;  %517 = vmatprep.subr.bf16.mxu0 %v577_v0  ;;  %v580_v3 = vld [vmem:[%s747_s1 + $0x30] sm:$0xff]   ;;  %v582_v5 = vld [vmem:[%s747_s1 + $0x28] sm:$0xff]   ;;  %v648_v10 = vshrl.u32 %v42_v7, 7 }
   0x3   :  { %537 = vmatprep.subr.bf16.mxu1 %v578_v1  ;;  %518 = vmatpush3.bf16.msra.mxu0 %v577_v0  ;;  %v583_v6 = vld [vmem:[%s747_s1 + $0x60] sm:$0xff]   ;;  %v585_v9 = vld [vmem:[%s747_s1 + $0x58] sm:$0xff]   ;;  %v587_v12 = vld [vmem:[%s747_s1 + $0x50] sm:$0xff]  }
   0x4   :  { %538 = vmatpush3.bf16.msra.mxu1 %v578_v1  ;;  %519 = vmatprep.subr.bf16.mxu0 %v579_v2  ;;  %v584_v8 = vld [vmem:[%s747_s1 + $0x20] sm:$0xff]   ;;  %v586_v11 = vld [vmem:[%s747_s1 + $0x18] sm:$0xff]   ;;  %v15_v14 = vld [vmem:[%s748_s0 + $0x8] sm:$0xff]  ;;  %vm44_vm0 = vcmp.lt.s32.totalorder %v648_v10, 7  ;;  %vm268_vm1 = vcmp.lt.s32.totalorder %v648_v10, 6 }
   0x5   :  { %539 = vmatprep.subr.bf16.mxu1 %v580_v3  ;;  %v14_v13 = vld [vmem:[%s748_s0] sm:$0xff]  ;;  %v16_v15 = vld [vmem:[%s748_s0 + $0x10] sm:$0xff]  ;;  %v40_v18 = vrot.slane %v15_v14, 1  ;;  %v589_v20 = vld [vmem:[%s747_s1 + $0x48] sm:$0xff]   ;;  %v266_v36 = vrot.slane %v15_v14, 2 }
   0x6   :  { %v588_v16 = vld [vmem:[%s747_s1 + $0x10] sm:$0xff]   ;;  %v39_v17 = vrot.slane %v14_v13, 1  ;;  %v41_v19 = vrot.slane %v16_v15, 1  ;;  %v21_v21 = vpack.c.bf16 %v15_v14, %v14_v13  ;;  %v675_v22 = vld [vmem:[%s748_s0 + $0x18] sm:$0xff]  ;;  %v684_v25 = vld [vmem:[%s748_s0 + $0x20] sm:$0xff]  ;;  %v267_v34 = vrot.slane %v16_v15, 2 }
   0x7   :  { %520 = vmatpush3.bf16.msra.mxu0 %v579_v2  ;;  %v430_v27 = vld [vmem:[%s748_s0 + $0x28] sm:$0xff]  ;;  %v591_v29 = vld [vmem:[%s747_s1 + $0x40] sm:$0xff]   ;;  %v47_v30 = vrot.slane %v675_v22, 1  ;;  %v48_v31 = vrot.slane %v684_v25, 1  ;;  %v265_v35 = vrot.slane %v14_v13, 2  ;;  %v593_v39 = vld [vmem:[%s747_s1 + $0xb8] sm:$0xff]   ;;  %v22_v43 = vpack.c.bf16 %v684_v25, %v675_v22 }
   0x8   :  { %540 = vmatpush3.bf16.msra.mxu1 %v580_v3  ;;  %521 = vmatprep.subr.bf16.mxu0 %v581_v4  ;;  %v45_v23 = vsel %vm44_vm0, %v40_v18, %v41_v19  ;;  %v46_v24 = vsel %vm44_vm0, %v39_v17, %v40_v18  ;;  %v590_v28 = vld [vmem:[%s747_s1 + $0x8] sm:$0xff]   ;;  %v49_v32 = vrot.slane %v430_v27, 1  ;;  %v592_v33 = vld [vmem:[%s747_s1] sm:$0xff]   ;;  %v269_v40 = vsel %vm268_vm1, %v266_v36, %v267_v34  ;;  %v594_v44 = vld [vmem:[%s747_s1 + $0xb0] sm:$0xff]  }
   0x9   :  { %541 = vmatprep.subr.bf16.mxu1 %v582_v5  ;;  %v52_v26 = vpack.c.bf16 %v45_v23, %v46_v24  ;;  %553 = vmatprep.mubr.bf16.mxu1 %v21_v21  ;;  %v51_v38 = vsel %vm44_vm0, %v47_v30, %v48_v31  ;;  %v270_v41 = vsel %vm268_vm1, %v265_v35, %v266_v36  ;;  %v595_v46 = vld [vmem:[%s747_s1 + $0xa8] sm:$0xff]   ;;  %v596_v47 = vld [vmem:[%s747_s1 + $0xa0] sm:$0xff]   ;;  %v597_v48 = vld [vmem:[%s747_s1 + $0x98] sm:$0xff]   ;;  %v273_v51 = vrot.slane %v430_v27, 2 }
   0xa   :  { %v50_v37 = vsel %vm44_vm0, %v48_v31, %v49_v32  ;;  %v276_v45 = vpack.c.bf16 %v269_v40, %v270_v41  ;;  %v598_v49 = vld [vmem:[%s747_s1 + $0x90] sm:$0xff]   ;;  %v599_v50 = vld [vmem:[%s747_s1 + $0x88] sm:$0xff]   ;;  %v271_v52 = vrot.slane %v675_v22, 2  ;;  %v272_v53 = vrot.slane %v684_v25, 2  ;;  %v600_v54 = vld [vmem:[%s747_s1 + $0x80] sm:$0xff]  }
   0xb   :  { %522 = vmatpush3.bf16.msra.mxu0 %v581_v4  ;;  %533 = vmatprep.mubr.bf16.mxu0 %v52_v26  ;;  %v53_v42 = vpack.c.bf16 %v50_v37, %v51_v38 }
   0xc   :  { %542 = vmatpush3.bf16.msra.mxu1 %v582_v5  ;;  %523 = vmatprep.subr.bf16.mxu0 %v583_v6  ;;  %v274_v55 = vsel %vm268_vm1, %v272_v53, %v273_v51  ;;  %v275_v56 = vsel %vm268_vm1, %v271_v52, %v272_v53 }
   0xd   :  { %543 = vmatprep.subr.bf16.mxu1 %v584_v8  ;;  %v277_v57 = vpack.c.bf16 %v274_v55, %v275_v56 }
   0xf   :  { %524 = vmatpush3.bf16.msra.mxu0 %v583_v6 }
  0x10   :  { %544 = vmatpush3.bf16.msra.mxu1 %v584_v8  ;;  %525 = vmatprep.subr.bf16.mxu0 %v585_v9 }
  0x11   :  { %545 = vmatprep.subr.bf16.mxu1 %v586_v11 }
  0x13   :  { %526 = vmatpush3.bf16.msra.mxu0 %v585_v9 }
  0x14   :  { %546 = vmatpush3.bf16.msra.mxu1 %v586_v11  ;;  %527 = vmatprep.subr.bf16.mxu0 %v587_v12 }
  0x15   :  { %547 = vmatprep.subr.bf16.mxu1 %v588_v16 }
  0x17   :  { %528 = vmatpush3.bf16.msra.mxu0 %v587_v12 }
  0x18   :  { %548 = vmatpush3.bf16.msra.mxu1 %v588_v16  ;;  %529 = vmatprep.subr.bf16.mxu0 %v589_v20 }
  0x19   :  { %549 = vmatprep.subr.bf16.mxu1 %v590_v28 }
  0x1b   :  { %530 = vmatpush3.bf16.msra.mxu0 %v589_v20 }
  0x1c   :  { %550 = vmatpush3.bf16.msra.mxu1 %v590_v28  ;;  %531 = vmatprep.subr.bf16.mxu0 %v591_v29 }
  0x1d   :  { %551 = vmatprep.subr.bf16.mxu1 %v592_v33 }
  0x1f   :  { %532 = vmatpush3.bf16.msra.mxu0 %v591_v29 }
  0x20   :  { %552 = vmatpush3.bf16.msra.mxu1 %v592_v33  ;;  %557 = vmatprep.subr.bf16.mxu0 %v593_v39 }
  0x22   :  { %534 = vmatmul.mubr.bf16.vlgmr.msra.gmra.mxu0 %v53_v42 }
  0x23   :  { %554 = vmatmul.mubr.bf16.vlgmr.msra.gmra.mxu1 %v22_v43  ;;  %558 = vmatpush3.bf16.msra.mxu0 %v593_v39 }
  0x24   :  { %559 = vmatprep.subr.bf16.mxu0 %v594_v44  ;;  %573 = vmatprep.mubr.bf16.mxu0 %v276_v45 }
  0x27   :  { %560 = vmatpush3.bf16.msra.mxu0 %v594_v44 }
  0x28   :  { %561 = vmatprep.subr.bf16.mxu0 %v595_v46 }
  0x2b   :  { %562 = vmatpush3.bf16.msra.mxu0 %v595_v46 }
  0x2c   :  { %563 = vmatprep.subr.bf16.mxu0 %v596_v47 }
  0x2f   :  { %564 = vmatpush3.bf16.msra.mxu0 %v596_v47 }
  0x30   :  { %565 = vmatprep.subr.bf16.mxu0 %v597_v48 }
  0x33   :  { %566 = vmatpush3.bf16.msra.mxu0 %v597_v48 }
  0x34   :  { %567 = vmatprep.subr.bf16.mxu0 %v598_v49 }
  0x37   :  { %568 = vmatpush3.bf16.msra.mxu0 %v598_v49 }
  0x38   :  { %569 = vmatprep.subr.bf16.mxu0 %v599_v50 }
  0x3b   :  { %570 = vmatpush3.bf16.msra.mxu0 %v599_v50 }
  0x3c   :  { %571 = vmatprep.subr.bf16.mxu0 %v600_v54 }
  0x3f   :  { %572 = vmatpush3.bf16.msra.mxu0 %v600_v54 }
  0x42   :  { %574 = vmatmul.mubr.bf16.vlgmr.msra.gmra.mxu0 %v277_v57 }
  0xe2   :  { %v535_v58 = vpop.f32.mrf.mxu0 }
  0xe3   :  { %v555_v59 = vpop.f32.mrf.mxu1 }
  0xe4   :  { %v153_v60 = vpop.f32.mrf.mxu0  ;;  %v259_v6 = vadd.f32 %v555_v59, %v535_v58 }
  0xe5   :  { %v250_v61 = vpop.f32.mrf.mxu1 }
  0xe6   :  { %v536_v62 = vpop.f32.mrf.mxu0  ;;  %v251_v4 = vadd.f32 %v250_v61, %v153_v60 }
  0xe7   :  { %v556_v63 = vpop.f32.mrf.mxu1 }
  0xe8   :  { %v156_v0 = vpop.f32.mrf.mxu0  ;;  %v262_v10 = vadd.f32 %v556_v63, %v536_v62 }
  0xe9   :  { %v253_v2 = vpop.f32.mrf.mxu1 }
  0xea   :  { %v254_v7 = vadd.f32 %v253_v2, %v156_v0 }
 0x102   :  { %v575_v1 = vpop.f32.mrf.mxu0 }
 0x103   :  { %v394_v11 = vadd.f32 %v575_v1, %v259_v6 }
 0x104   :  { %v377_v3 = vpop.f32.mrf.mxu0 }
 0x105   :  { %v392_v8 = vadd.f32 %v377_v3, %v251_v4  ;;  %v408_v17 = vmul.f32 %v394_v11, %v394_v11 }
 0x106   :  { %v576_v5 = vpop.f32.mrf.mxu0 }
 0x107   :  { %v406_v13 = vmul.f32 %v392_v8, %v392_v8  ;;  %v395_v14 = vadd.f32 %v576_v5, %v262_v10 }
 0x108   :  { %v380_v9 = vpop.f32.mrf.mxu0 }
 0x109   :  { %v393_v12 = vadd.f32 %v380_v9, %v254_v7  ;;  %v409_v20 = vmul.f32 %v395_v14, %v395_v14 }
 0x10b   :  { %v396_v15 = vadd.f32 %v393_v12, %v392_v8  ;;  %v407_v16 = vmul.f32 %v393_v12, %v393_v12 }
 0x10d   :  { %v397_v18 = vadd.f32 %v396_v15, %v394_v11  ;;  %v410_v19 = vadd.f32 %v407_v16, %v406_v13 }
 0x10f   :  { %v398_v21 = vadd.f32 %v397_v18, %v395_v14  ;;  %v411_v22 = vadd.f32 %v410_v19, %v408_v17 }
 0x111   :  { %v399_v23 = vrot.slane %v398_v21, 4  ;;  %v412_v24 = vadd.f32 %v411_v22, %v409_v20 }
 0x113   :  { %v400_v25 = vadd.f32 %v399_v23, %v398_v21  ;;  %v413_v26 = vrot.slane %v412_v24, 4 }
 0x115   :  { %v401_v27 = vrot.slane %v400_v25, 2  ;;  %v414_v28 = vadd.f32 %v413_v26, %v412_v24 }
 0x117   :  { %v402_v29 = vadd.f32 %v401_v27, %v400_v25  ;;  %v415_v30 = vrot.slane %v414_v28, 2 }
 0x119   :  { %v403_v31 = vrot.slane %v402_v29, 1  ;;  %v416_v32 = vadd.f32 %v415_v30, %v414_v28 }
 0x11b   :  { %v404_v33 = vadd.f32 %v403_v31, %v402_v29  ;;  %v417_v34 = vrot.slane %v416_v32, 1 }
 0x11d   :  { %405 = vst [vmem:[%s749_s2] sm:$0x1] %v404_v33  ;;  %v418_v35 = vadd.f32 %v417_v34, %v416_v32 }
 0x11f   :  { %419 = vst [vmem:[%s750_s3] sm:$0x1] %v418_v35 }

// kernel: conv2d_layer_forward.3
= control target key start
LH: loop header
LB: loop body
LE: loop exit
PB: predicated region body
PF: predicated region fallthrough
CT: control target
= control target key end

     0   :  { %v46_v7 = vlaneseq  ;;  %s772_s1 = inlined_call_operand.vmem [shape: bf16[3,128,128], index: 1, kind: input, shape index: {}]   ;;  %s773_s0 = inlined_call_operand.vmem [shape: f32[2,24,128], index: 0, kind: input, shape index: {}]   ;;  %s774_s2 = inlined_call_operand.vmem [shape: f32[1,128], index: 2, kind: input, shape index: {}]   ;;  %s775_s3 = inlined_call_operand.vmem [shape: f32[1,128], index: 3, kind: input, shape index: {}]   ;;  %s776_s4 = inlined_call_operand.vmem [shape: f32[2,16,128], index: 4, kind: output, shape index: {}]  }
   0x1   :  { %v585_v0 = vld [vmem:[%s772_s1 + $0x78] sm:$0xff]   ;;  %v587_v2 = vld [vmem:[%s772_s1 + $0x70] sm:$0xff]   ;;  %v589_v4 = vld [vmem:[%s772_s1 + $0x68] sm:$0xff]  }
   0x2   :  { %v586_v1 = vld [vmem:[%s772_s1 + $0x38] sm:$0xff]   ;;  %525 = vmatprep.subr.bf16.mxu0 %v585_v0  ;;  %v588_v3 = vld [vmem:[%s772_s1 + $0x30] sm:$0xff]   ;;  %v590_v5 = vld [vmem:[%s772_s1 + $0x28] sm:$0xff]   ;;  %v661_v10 = vshrl.u32 %v46_v7, 7 }
   0x3   :  { %545 = vmatprep.subr.bf16.mxu1 %v586_v1  ;;  %526 = vmatpush3.bf16.msra.mxu0 %v585_v0  ;;  %v591_v6 = vld [vmem:[%s772_s1 + $0x60] sm:$0xff]   ;;  %v593_v9 = vld [vmem:[%s772_s1 + $0x58] sm:$0xff]   ;;  %v595_v12 = vld [vmem:[%s772_s1 + $0x50] sm:$0xff]  }
   0x4   :  { %546 = vmatpush3.bf16.msra.mxu1 %v586_v1  ;;  %527 = vmatprep.subr.bf16.mxu0 %v587_v2  ;;  %v592_v8 = vld [vmem:[%s772_s1 + $0x20] sm:$0xff]   ;;  %v594_v11 = vld [vmem:[%s772_s1 + $0x18] sm:$0xff]   ;;  %v19_v14 = vld [vmem:[%s773_s0 + $0x8] sm:$0xff]  ;;  %vm48_vm0 = vcmp.lt.s32.totalorder %v661_v10, 7  ;;  %vm272_vm1 = vcmp.lt.s32.totalorder %v661_v10, 6 }
   0x5   :  { %547 = vmatprep.subr.bf16.mxu1 %v588_v3  ;;  %v18_v13 = vld [vmem:[%s773_s0] sm:$0xff]  ;;  %v20_v15 = vld [vmem:[%s773_s0 + $0x10] sm:$0xff]  ;;  %v44_v18 = vrot.slane %v19_v14, 1  ;;  %v597_v20 = vld [vmem:[%s772_s1 + $0x48] sm:$0xff]   ;;  %v270_v36 = vrot.slane %v19_v14, 2 }
   0x6   :  { %v596_v16 = vld [vmem:[%s772_s1 + $0x10] sm:$0xff]   ;;  %v43_v17 = vrot.slane %v18_v13, 1  ;;  %v45_v19 = vrot.slane %v20_v15, 1  ;;  %v25_v21 = vpack.c.bf16 %v19_v14, %v18_v13  ;;  %v688_v22 = vld [vmem:[%s773_s0 + $0x18] sm:$0xff]  ;;  %v697_v25 = vld [vmem:[%s773_s0 + $0x20] sm:$0xff]  ;;  %v271_v34 = vrot.slane %v20_v15, 2 }
   0x7   :  { %528 = vmatpush3.bf16.msra.mxu0 %v587_v2  ;;  %v436_v27 = vld [vmem:[%s773_s0 + $0x28] sm:$0xff]  ;;  %v599_v29 = vld [vmem:[%s772_s1 + $0x40] sm:$0xff]   ;;  %v51_v30 = vrot.slane %v688_v22, 1  ;;  %v52_v31 = vrot.slane %v697_v25, 1  ;;  %v269_v35 = vrot.slane %v18_v13, 2  ;;  %v601_v39 = vld [vmem:[%s772_s1 + $0xb8] sm:$0xff]   ;;  %v26_v43 = vpack.c.bf16 %v697_v25, %v688_v22 }
   0x8   :  { %548 = vmatpush3.bf16.msra.mxu1 %v588_v3  ;;  %529 = vmatprep.subr.bf16.mxu0 %v589_v4  ;;  %v49_v23 = vsel %vm48_vm0, %v44_v18, %v45_v19  ;;  %v50_v24 = vsel %vm48_vm0, %v43_v17, %v44_v18  ;;  %v598_v28 = vld [vmem:[%s772_s1 + $0x8] sm:$0xff]   ;;  %v53_v32 = vrot.slane %v436_v27, 1  ;;  %v600_v33 = vld [vmem:[%s772_s1] sm:$0xff]   ;;  %v273_v40 = vsel %vm272_vm1, %v270_v36, %v271_v34  ;;  %v602_v44 = vld [vmem:[%s772_s1 + $0xb0] sm:$0xff]  }
   0x9   :  { %549 = vmatprep.subr.bf16.mxu1 %v590_v5  ;;  %v56_v26 = vpack.c.bf16 %v49_v23, %v50_v24  ;;  %561 = vmatprep.mubr.bf16.mxu1 %v25_v21  ;;  %v55_v38 = vsel %vm48_vm0, %v51_v30, %v52_v31  ;;  %v274_v41 = vsel %vm272_vm1, %v269_v35, %v270_v36  ;;  %v603_v46 = vld [vmem:[%s772_s1 + $0xa8] sm:$0xff]   ;;  %v604_v47 = vld [vmem:[%s772_s1 + $0xa0] sm:$0xff]   ;;  %v605_v48 = vld [vmem:[%s772_s1 + $0x98] sm:$0xff]   ;;  %v277_v51 = vrot.slane %v436_v27, 2 }
   0xa   :  { %v54_v37 = vsel %vm48_vm0, %v52_v31, %v53_v32  ;;  %v280_v45 = vpack.c.bf16 %v273_v40, %v274_v41  ;;  %v606_v49 = vld [vmem:[%s772_s1 + $0x90] sm:$0xff]   ;;  %v607_v50 = vld [vmem:[%s772_s1 + $0x88] sm:$0xff]   ;;  %v275_v52 = vrot.slane %v688_v22, 2  ;;  %v276_v53 = vrot.slane %v697_v25, 2  ;;  %v608_v54 = vld [vmem:[%s772_s1 + $0x80] sm:$0xff]  }
   0xb   :  { %530 = vmatpush3.bf16.msra.mxu0 %v589_v4  ;;  %541 = vmatprep.mubr.bf16.mxu0 %v56_v26  ;;  %v57_v42 = vpack.c.bf16 %v54_v37, %v55_v38  ;;  %v493_v3 = vld [vmem:[%s774_s2] ss:$0 sm:$0xff] }
   0xc   :  { %550 = vmatpush3.bf16.msra.mxu1 %v590_v5  ;;  %531 = vmatprep.subr.bf16.mxu0 %v591_v6  ;;  %v278_v55 = vsel %vm272_vm1, %v276_v53, %v277_v51  ;;  %v279_v56 = vsel %vm272_vm1, %v275_v52, %v276_v53  ;;  %v494_v7 = vld [vmem:[%s775_s3] ss:$0 sm:$0xff] }
   0xd   :  { %551 = vmatprep.subr.bf16.mxu1 %v592_v8  ;;  %v281_v57 = vpack.c.bf16 %v278_v55, %v279_v56 }
   0xf   :  { %532 = vmatpush3.bf16.msra.mxu0 %v591_v6 }
  0x10   :  { %552 = vmatpush3.bf16.msra.mxu1 %v592_v8  ;;  %533 = vmatprep.subr.bf16.mxu0 %v593_v9 }
  0x11   :  { %553 = vmatprep.subr.bf16.mxu1 %v594_v11 }
  0x13   :  { %534 = vmatpush3.bf16.msra.mxu0 %v593_v9 }
  0x14   :  { %554 = vmatpush3.bf16.msra.mxu1 %v594_v11  ;;  %535 = vmatprep.subr.bf16.mxu0 %v595_v12 }
  0x15   :  { %555 = vmatprep.subr.bf16.mxu1 %v596_v16 }
  0x17   :  { %536 = vmatpush3.bf16.msra.mxu0 %v595_v12 }
  0x18   :  { %556 = vmatpush3.bf16.msra.mxu1 %v596_v16  ;;  %537 = vmatprep.subr.bf16.mxu0 %v597_v20 }
  0x19   :  { %557 = vmatprep.subr.bf16.mxu1 %v598_v28 }
  0x1b   :  { %538 = vmatpush3.bf16.msra.mxu0 %v597_v20 }
  0x1c   :  { %558 = vmatpush3.bf16.msra.mxu1 %v598_v28  ;;  %539 = vmatprep.subr.bf16.mxu0 %v599_v29 }
  0x1d   :  { %559 = vmatprep.subr.bf16.mxu1 %v600_v33 }
  0x1f   :  { %540 = vmatpush3.bf16.msra.mxu0 %v599_v29 }
  0x20   :  { %560 = vmatpush3.bf16.msra.mxu1 %v600_v33  ;;  %565 = vmatprep.subr.bf16.mxu0 %v601_v39 }
  0x22   :  { %542 = vmatmul.mubr.bf16.vlgmr.msra.gmra.mxu0 %v57_v42 }
  0x23   :  { %562 = vmatmul.mubr.bf16.vlgmr.msra.gmra.mxu1 %v26_v43  ;;  %566 = vmatpush3.bf16.msra.mxu0 %v601_v39 }
  0x24   :  { %567 = vmatprep.subr.bf16.mxu0 %v602_v44  ;;  %581 = vmatprep.mubr.bf16.mxu0 %v280_v45 }
  0x27   :  { %568 = vmatpush3.bf16.msra.mxu0 %v602_v44 }
  0x28   :  { %569 = vmatprep.subr.bf16.mxu0 %v603_v46 }
  0x2b   :  { %570 = vmatpush3.bf16.msra.mxu0 %v603_v46 }
  0x2c   :  { %571 = vmatprep.subr.bf16.mxu0 %v604_v47 }
  0x2f   :  { %572 = vmatpush3.bf16.msra.mxu0 %v604_v47 }
  0x30   :  { %573 = vmatprep.subr.bf16.mxu0 %v605_v48 }
  0x33   :  { %574 = vmatpush3.bf16.msra.mxu0 %v605_v48 }
  0x34   :  { %575 = vmatprep.subr.bf16.mxu0 %v606_v49 }
  0x37   :  { %576 = vmatpush3.bf16.msra.mxu0 %v606_v49 }
  0x38   :  { %577 = vmatprep.subr.bf16.mxu0 %v607_v50 }
  0x3b   :  { %578 = vmatpush3.bf16.msra.mxu0 %v607_v50 }
  0x3c   :  { %579 = vmatprep.subr.bf16.mxu0 %v608_v54 }
  0x3f   :  { %580 = vmatpush3.bf16.msra.mxu0 %v608_v54 }
  0x42   :  { %582 = vmatmul.mubr.bf16.vlgmr.msra.gmra.mxu0 %v281_v57 }
  0xe2   :  { %v543_v58 = vpop.f32.mrf.mxu0 }
  0xe3   :  { %v563_v59 = vpop.f32.mrf.mxu1 }
  0xe4   :  { %v157_v60 = vpop.f32.mrf.mxu0  ;;  %v263_v1 = vadd.f32 %v563_v59, %v543_v58 }
  0xe5   :  { %v254_v61 = vpop.f32.mrf.mxu1 }
  0xe6   :  { %v544_v62 = vpop.f32.mrf.mxu0  ;;  %v255_v4 = vadd.f32 %v254_v61, %v157_v60 }
  0xe7   :  { %v564_v63 = vpop.f32.mrf.mxu1 }
  0xe8   :  { %v160_v0 = vpop.f32.mrf.mxu0  ;;  %v266_v9 = vadd.f32 %v564_v63, %v544_v62 }
  0xe9   :  { %v257_v6 = vpop.f32.mrf.mxu1 }
  0xea   :  { %v258_v13 = vadd.f32 %v257_v6, %v160_v0 }
 0x102   :  { %v583_v2 = vpop.f32.mrf.mxu0 }
 0x103   :  { %v398_v5 = vadd.f32 %v583_v2, %v263_v1 }
 0x104   :  { %v381_v8 = vpop.f32.mrf.mxu0 }
 0x105   :  { %v409_v10 = vmul.f32 %v493_v3, %v398_v5  ;;  %v396_v11 = vadd.f32 %v381_v8, %v255_v4 }
 0x106   :  { %v584_v12 = vpop.f32.mrf.mxu0 }
 0x107   :  { %v420_v14 = vadd.f32 %v494_v7, %v409_v10  ;;  %v407_v15 = vmul.f32 %v493_v3, %v396_v11  ;;  %v399_v16 = vadd.f32 %v584_v12, %v266_v9 }
 0x108   :  { %v384_v17 = vpop.f32.mrf.mxu0 }
 0x109   :  { %v424_v18 = vmax.f32 %v420_v14, 0.0  ;;  %v418_v19 = vadd.f32 %v494_v7, %v407_v15  ;;  %v410_v20 = vmul.f32 %v493_v3, %v399_v16  ;;  %v397_v21 = vadd.f32 %v384_v17, %v258_v13 }
 0x10b   :  { %428 = vst [vmem:[%s776_s4 + $0x10] sm:$0xff] %v424_v18  ;;  %v422_v22 = vmax.f32 %v418_v19, 0.0  ;;  %v421_v23 = vadd.f32 %v494_v7, %v410_v20  ;;  %v408_v24 = vmul.f32 %v493_v3, %v397_v21 }
 0x10d   :  { %426 = vst [vmem:[%s776_s4] sm:$0xff] %v422_v22  ;;  %v425_v25 = vmax.f32 %v421_v23, 0.0  ;;  %v419_v26 = vadd.f32 %v494_v7, %v408_v24 }
 0x10f   :  { %429 = vst [vmem:[%s776_s4 + $0x18] sm:$0xff] %v425_v25  ;;  %v423_v27 = vmax.f32 %v419_v26, 0.0 }
 0x111   :  { %427 = vst [vmem:[%s776_s4 + $0x8] sm:$0xff] %v423_v27 }

</bundles_post_ra>
